<compile_context>
chip_gen: v7x
topology: tpu7x:2x2x1
jax: 0.10.0
libtpu: 0.0.40
codegen_flags: <defaults>
</compile_context>

<pallas_src>
import jax
import jax.numpy as jnp
from jax.experimental import pallas as pl
from jax.experimental.pallas import tpu as pltpu


def _round_up(x, m):
    return (x + m - 1) // m * m


def _mlp_policy_kernel(xT_ref, w1_ref, b1_ref, w2_ref, b2_ref, w3_ref, b3_ref,
                       logpT_ref):
    """One batch tile; columns = batch elements (lanes), rows = features."""
    # hidden layer 0: h^T = relu(W1 @ x^T + b1)            -> (HID, TB), f32
    h = jnp.dot(w1_ref[...], xT_ref[...],
                preferred_element_type=jnp.float32) + b1_ref[...]
    h = jnp.maximum(h, 0.0)
    # hidden layer 1: h^T = relu(W2 @ h^T + b2)            -> (HID, TB), f32
    h = jnp.dot(w2_ref[...], h.astype(w2_ref.dtype),
                preferred_element_type=jnp.float32) + b2_ref[...]
    h = jnp.maximum(h, 0.0)
    # output layer: logits^T = W3 @ h^T + b3               -> (ACT, TB), f32
    logits = jnp.dot(w3_ref[...], h.astype(w3_ref.dtype),
                     preferred_element_type=jnp.float32) + b3_ref[...]
    # Categorical(logits=...) log-prob table = logits - logsumexp(logits).
    # The reduction is over the tiny action (sublane) axis; stores stay
    # lane-dense over the batch axis.
    m = jnp.max(logits, axis=0, keepdims=True)
    lse = m + jnp.log(jnp.sum(jnp.exp(logits - m), axis=0, keepdims=True))
    logpT_ref[...] = logits - lse


def discrete_mlp_policy_forward(states, params, *, batch_tile=1024,
                                compute_dtype=jnp.float32):
    """MLP policy forward: returns normalized log-probs, shape (B, n_actions).

    `params` are PyTorch-layout: weights (out_features, in_features), biases
    (out_features, 1), all f32.  `compute_dtype` (f32 or bf16) applies only to
    the MXU operands (states + weights); the epilogue stays f32.
    """
    w1, b1, w2, b2, w3, b3 = params
    B, obs_dim = states.shape
    act_dim = w3.shape[0]

    # Batch sits on the lane axis: pick a lane-aligned tile and pad the batch.
    tb = _round_up(min(int(batch_tile), _round_up(B, 128)), 128)
    Bp = _round_up(B, tb)

    xT = states.T                                   # (obs, B)
    if Bp != B:
        xT = jnp.pad(xT, ((0, 0), (0, Bp - B)))     # zero rows -> sliced away below

    xT = xT.astype(compute_dtype)
    w1c, w2c, w3c = (w.astype(compute_dtype) for w in (w1, w2, w3))

    grid = (Bp // tb,)
    in_specs = [
        # streamed states: one (obs, tb) tile per grid step (double-buffered)
        pl.BlockSpec((obs_dim, tb), lambda i: (0, i)),
        # parameters: whole-array blocks, constant block index -> loaded once,
        # resident in VMEM across all batch-grid steps.
        pl.BlockSpec(w1c.shape, lambda i: (0, 0)),
        pl.BlockSpec(b1.shape, lambda i: (0, 0)),
        pl.BlockSpec(w2c.shape, lambda i: (0, 0)),
        pl.BlockSpec(b2.shape, lambda i: (0, 0)),
        pl.BlockSpec(w3c.shape, lambda i: (0, 0)),
        pl.BlockSpec(b3.shape, lambda i: (0, 0)),
    ]
    out_spec = pl.BlockSpec((act_dim, tb), lambda i: (0, i))

    logpT = pl.pallas_call(
        _mlp_policy_kernel,
        grid=grid,
        in_specs=in_specs,
        out_specs=out_spec,
        out_shape=jax.ShapeDtypeStruct((act_dim, Bp), jnp.float32),
        compiler_params=pltpu.CompilerParams(
            dimension_semantics=("parallel",)),
    )(xT, w1c, b1, w2c, b2, w3c, b3)

    # Cheap wrapper-side layout fixup back to (B, n_actions).
    return logpT[:, :B].T


def sample_actions(key, states, params, **kwargs):
    """Categorical(logits).sample() equivalent (wrapper-side)."""
    log_probs = discrete_mlp_policy_forward(states, params, **kwargs)
    # TODO(synk): optionally fuse Gumbel-argmax sampling into the kernel via
    # pltpu.prng_seed / pltpu.prng_random_bits to avoid writing the (B, A) table.
    return jax.random.categorical(key, log_probs, axis=-1)


def init_params(key, input_dim, hidden_dim, output_dim, num_layers):
    """nn.Linear default init U(-1/sqrt(fan_in), 1/sqrt(fan_in)).

    Weights are stored in PyTorch layout (out_features, in_features) so the
    kernel computes W @ x^T directly; biases are (out_features, 1).
    """
    assert num_layers == 2, "this script builds the num_layers=2 instance"
    dims = [input_dim] + [hidden_dim] * num_layers + [output_dim]
    params = []
    for d_in, d_out in zip(dims[:-1], dims[1:]):
        key, kw, kb = jax.random.split(key, 3)
        bound = 1.0 / jnp.sqrt(jnp.float32(d_in))
        w = jax.random.uniform(kw, (d_out, d_in), jnp.float32, -bound, bound)
        b = jax.random.uniform(kb, (d_out, 1), jnp.float32, -bound, bound)
        params += [w, b]
    return tuple(params)


if __name__ == "__main__":
    # Small shapes consistent with a MuJoCo-style discrete env:
    #   observation_space.shape[0] = 16, action_space.n = 6,
    #   num_layers = 2, hidden_dim = 32, batch = 8.
    B, OBS, HID, ACT, NLAYERS = 8, 16, 32, 6, 2

    key = jax.random.PRNGKey(0)
    key, k_states = jax.random.split(key)
    states = jax.random.normal(k_states, (B, OBS), jnp.float32)
    params = init_params(key, OBS, HID, ACT, NLAYERS)

    # f32 path (default) — tight tolerance.
    log_probs = discrete_mlp_policy_forward(states, params)
    jax.block_until_ready(log_probs)

    # Plain-JAX reference of the same forward (PyTorch-layout params).
    w1, b1, w2, b2, w3, b3 = params
    h = jnp.maximum(states @ w1.T + b1[:, 0], 0.0)
    h = jnp.maximum(h @ w2.T + b2[:, 0], 0.0)
    ref_logits = h @ w3.T + b3[:, 0]
    ref_logp = ref_logits - jax.scipy.special.logsumexp(
        ref_logits, axis=-1, keepdims=True)
    assert log_probs.shape == (B, ACT)
    assert jnp.allclose(log_probs, ref_logp, atol=1e-5, rtol=1e-5)

    # bf16 MXU-operand path (v6e/v7x recommendation) — looser tolerance;
    # elementwise / logsumexp stay f32, so this is also safe on v5e.
    log_probs_bf16 = discrete_mlp_policy_forward(
        states, params, compute_dtype=jnp.bfloat16)
    jax.block_until_ready(log_probs_bf16)
    assert jnp.allclose(log_probs_bf16, ref_logp, atol=2e-2, rtol=2e-2)

    # Categorical-style sampling (wrapper-side).
    key, k_sample = jax.random.split(key)
    actions = sample_actions(k_sample, states, params)
    jax.block_until_ready(actions)
    assert actions.shape == (B,)

    print("KERNEL_OK")
</pallas_src>

<mosaic_0001>
module attributes {stable_mosaic.version = 11 : i64} {
  func.func @_mlp_policy_kernel(%arg0: i32, %arg1: memref<16x128xf32, #tpu.memory_space<vmem>>, %arg2: memref<32x16xf32, #tpu.memory_space<vmem>>, %arg3: memref<32x1xf32, #tpu.memory_space<vmem>>, %arg4: memref<32x32xf32, #tpu.memory_space<vmem>>, %arg5: memref<32x1xf32, #tpu.memory_space<vmem>>, %arg6: memref<6x32xf32, #tpu.memory_space<vmem>>, %arg7: memref<6x1xf32, #tpu.memory_space<vmem>>, %arg8: memref<6x128xf32, #tpu.memory_space<vmem>>) attributes {dimension_semantics = [#tpu.dimension_semantics<parallel>], iteration_bounds = array<i64: 1>, scalar_prefetch = 0 : i64, scratch_operands = 0 : i64, tpu.core_type = #tpu.core_type<tc>, window_params = [{transform_indices = @transform_0, window_bounds = array<i64: 16, 128>}, {pipeline_mode = #tpu.pipeline_mode<synchronous>, transform_indices = @transform_1, window_bounds = array<i64: 32, 16>}, {pipeline_mode = #tpu.pipeline_mode<synchronous>, transform_indices = @transform_2, window_bounds = array<i64: 32, 1>}, {pipeline_mode = #tpu.pipeline_mode<synchronous>, transform_indices = @transform_3, window_bounds = array<i64: 32, 32>}, {pipeline_mode = #tpu.pipeline_mode<synchronous>, transform_indices = @transform_4, window_bounds = array<i64: 32, 1>}, {pipeline_mode = #tpu.pipeline_mode<synchronous>, transform_indices = @transform_5, window_bounds = array<i64: 6, 32>}, {pipeline_mode = #tpu.pipeline_mode<synchronous>, transform_indices = @transform_6, window_bounds = array<i64: 6, 1>}, {transform_indices = @transform_7, window_bounds = array<i64: 6, 128>}]} {
    %c0 = arith.constant 0 : index
    %c0_0 = arith.constant 0 : index
    %0 = vector.load %arg2[%c0, %c0_0] : memref<32x16xf32, #tpu.memory_space<vmem>>, vector<32x16xf32>
    %c0_1 = arith.constant 0 : index
    %c0_2 = arith.constant 0 : index
    %1 = vector.load %arg1[%c0_1, %c0_2] : memref<16x128xf32, #tpu.memory_space<vmem>>, vector<16x128xf32>
    %cst = arith.constant dense<0.000000e+00> : vector<32x128xf32>
    %2 = tpu.matmul %0, %1, %cst {dimension_numbers = #tpu.dot_dimension_numbers<[1], [0], [0], [1], [0, 0, 1, 1], [], []>} : vector<32x16xf32>, vector<16x128xf32>, vector<32x128xf32> -> vector<32x128xf32>
    %c0_3 = arith.constant 0 : index
    %c0_4 = arith.constant 0 : index
    %3 = vector.load %arg3[%c0_3, %c0_4] : memref<32x1xf32, #tpu.memory_space<vmem>>, vector<32x1xf32>
    %4 = vector.broadcast %3 : vector<32x1xf32> to vector<32x128xf32>
    %5 = arith.addf %2, %4 : vector<32x128xf32>
    %cst_5 = arith.constant 0.000000e+00 : f32
    %6 = vector.broadcast %cst_5 : f32 to vector<32x128xf32>
    %7 = arith.maximumf %5, %6 : vector<32x128xf32>
    %c0_6 = arith.constant 0 : index
    %c0_7 = arith.constant 0 : index
    %8 = vector.load %arg4[%c0_6, %c0_7] : memref<32x32xf32, #tpu.memory_space<vmem>>, vector<32x32xf32>
    %cst_8 = arith.constant dense<0.000000e+00> : vector<32x128xf32>
    %9 = tpu.matmul %8, %7, %cst_8 {dimension_numbers = #tpu.dot_dimension_numbers<[1], [0], [0], [1], [0, 0, 1, 1], [], []>} : vector<32x32xf32>, vector<32x128xf32>, vector<32x128xf32> -> vector<32x128xf32>
    %c0_9 = arith.constant 0 : index
    %c0_10 = arith.constant 0 : index
    %10 = vector.load %arg5[%c0_9, %c0_10] : memref<32x1xf32, #tpu.memory_space<vmem>>, vector<32x1xf32>
    %11 = vector.broadcast %10 : vector<32x1xf32> to vector<32x128xf32>
    %12 = arith.addf %9, %11 : vector<32x128xf32>
    %cst_11 = arith.constant 0.000000e+00 : f32
    %13 = vector.broadcast %cst_11 : f32 to vector<32x128xf32>
    %14 = arith.maximumf %12, %13 : vector<32x128xf32>
    %c0_12 = arith.constant 0 : index
    %c0_13 = arith.constant 0 : index
    %15 = vector.load %arg6[%c0_12, %c0_13] : memref<6x32xf32, #tpu.memory_space<vmem>>, vector<6x32xf32>
    %cst_14 = arith.constant dense<0.000000e+00> : vector<6x128xf32>
    %16 = tpu.matmul %15, %14, %cst_14 {dimension_numbers = #tpu.dot_dimension_numbers<[1], [0], [0], [1], [0, 0, 1, 1], [], []>} : vector<6x32xf32>, vector<32x128xf32>, vector<6x128xf32> -> vector<6x128xf32>
    %c0_15 = arith.constant 0 : index
    %c0_16 = arith.constant 0 : index
    %17 = vector.load %arg7[%c0_15, %c0_16] : memref<6x1xf32, #tpu.memory_space<vmem>>, vector<6x1xf32>
    %18 = vector.broadcast %17 : vector<6x1xf32> to vector<6x128xf32>
    %19 = arith.addf %16, %18 : vector<6x128xf32>
    %cst_17 = arith.constant dense<0xFF800000> : vector<128xf32>
    %20 = vector.multi_reduction <maximumf>, %19, %cst_17 [0] : vector<6x128xf32> to vector<128xf32>
    %21 = vector.shape_cast %20 : vector<128xf32> to vector<1x128xf32>
    %22 = vector.broadcast %21 : vector<1x128xf32> to vector<6x128xf32>
    %23 = arith.subf %19, %22 : vector<6x128xf32>
    %24 = math.exp %23 : vector<6x128xf32>
    %cst_18 = arith.constant dense<0.000000e+00> : vector<128xf32>
    %25 = vector.multi_reduction <add>, %24, %cst_18 [0] : vector<6x128xf32> to vector<128xf32>
    %26 = vector.shape_cast %25 : vector<128xf32> to vector<1x128xf32>
    %27 = math.log %26 : vector<1x128xf32>
    %28 = arith.addf %21, %27 : vector<1x128xf32>
    %29 = vector.broadcast %28 : vector<1x128xf32> to vector<6x128xf32>
    %30 = arith.subf %19, %29 : vector<6x128xf32>
    %c0_19 = arith.constant 0 : index
    %c0_20 = arith.constant 0 : index
    %31 = vector.load %arg8[%c0_19, %c0_20] : memref<6x128xf32, #tpu.memory_space<vmem>>, vector<6x128xf32>
    tpu.vector_store %arg8[%c0_19, %c0_20], %30 {strides = array<i32>} : memref<6x128xf32, #tpu.memory_space<vmem>>, vector<6x128xf32>,
    return
  }
  func.func @transform_0(%arg0: i32) -> (i32, i32) {
    %c0_i32 = arith.constant 0 : i32
    %c0_i32_0 = arith.constant 0 : i32
    return %c0_i32, %arg0 : i32, i32
  }
  func.func @transform_1(%arg0: i32) -> (i32, i32) {
    %c0_i32 = arith.constant 0 : i32
    %c0_i32_0 = arith.constant 0 : i32
    %c0_i32_1 = arith.constant 0 : i32
    return %c0_i32, %c0_i32_0 : i32, i32
  }
  func.func @transform_2(%arg0: i32) -> (i32, i32) {
    %c0_i32 = arith.constant 0 : i32
    %c0_i32_0 = arith.constant 0 : i32
    %c0_i32_1 = arith.constant 0 : i32
    return %c0_i32, %c0_i32_0 : i32, i32
  }
  func.func @transform_3(%arg0: i32) -> (i32, i32) {
    %c0_i32 = arith.constant 0 : i32
    %c0_i32_0 = arith.constant 0 : i32
    %c0_i32_1 = arith.constant 0 : i32
    return %c0_i32, %c0_i32_0 : i32, i32
  }
  func.func @transform_4(%arg0: i32) -> (i32, i32) {
    %c0_i32 = arith.constant 0 : i32
    %c0_i32_0 = arith.constant 0 : i32
    %c0_i32_1 = arith.constant 0 : i32
    return %c0_i32, %c0_i32_0 : i32, i32
  }
  func.func @transform_5(%arg0: i32) -> (i32, i32) {
    %c0_i32 = arith.constant 0 : i32
    %c0_i32_0 = arith.constant 0 : i32
    %c0_i32_1 = arith.constant 0 : i32
    return %c0_i32, %c0_i32_0 : i32, i32
  }
  func.func @transform_6(%arg0: i32) -> (i32, i32) {
    %c0_i32 = arith.constant 0 : i32
    %c0_i32_0 = arith.constant 0 : i32
    %c0_i32_1 = arith.constant 0 : i32
    return %c0_i32, %c0_i32_0 : i32, i32
  }
  func.func @transform_7(%arg0: i32) -> (i32, i32) {
    %c0_i32 = arith.constant 0 : i32
    %c0_i32_0 = arith.constant 0 : i32
    return %c0_i32, %arg0 : i32, i32
  }
}

</mosaic_0001>

<bundles_post_ra>
// kernel: tpu_custom_call.1
= control target key start
LH: loop header
LB: loop body
LE: loop exit
PB: predicated region body
PF: predicated region fallthrough
CT: control target
= control target key end

     0   :  { %vm57_vm0 = vcmask 130048   ;;  %v522_v4 = vmov 0   ;;  %s648_s0 = inlined_call_operand.vmem [shape: f32[16,128], index: 0, kind: input, shape index: {}]   ;;  %s649_s1 = inlined_call_operand.vmem [shape: f32[32,16], index: 1, kind: input, shape index: {}]   ;;  %s650_s2 = inlined_call_operand.vmem [shape: f32[32,1], index: 2, kind: input, shape index: {}]   ;;  %s651_s3 = inlined_call_operand.vmem [shape: f32[32,32], index: 3, kind: input, shape index: {}]   ;;  %s652_s4 = inlined_call_operand.vmem [shape: f32[32,1], index: 4, kind: input, shape index: {}]   ;;  %s653_s5 = inlined_call_operand.vmem [shape: f32[6,32], index: 5, kind: input, shape index: {}]   ;;  %s654_s6 = inlined_call_operand.vmem [shape: f32[6,1], index: 6, kind: input, shape index: {}]   ;;  %s655_s7 = inlined_call_operand.hbm [shape: f32[6,128], index: 7, kind: output, shape index: {}]  }
   0x1   :  { %v31_v0 = vld [vmem:[%s648_s0] sm:$0xff]  ;;  %v32_v1 = vld [vmem:[%s648_s0 + $0x8] sm:$0xff]  ;;  %492 = vset.pattern.permute.xlu0 %v522_v4  ;;  %493 = vset.pattern.permute.xlu1 %v522_v4  ;;  %v35_v6 = vld [vmem:[%s650_s2 + $0x10] sm:$0xff] }
   0x2   :  { %v27_v2 = vld [vmem:[%s649_s1] sm:$0xff]  ;;  %v469_v3 = vpack.c.bf16 %v32_v1, %v31_v0  ;;  %v28_v7 = vld [vmem:[%s649_s1 + $0x8] sm:$0xff]  ;;  %49 = vperm.xlu1 %493, %v35_v6   ;;  %v29_v9 = vld [vmem:[%s649_s1 + $0x10] sm:$0xff] }
   0x3   :  { %438 = vmatprep.mubr.msk.f32.mxu0 %vm57_vm0, %v27_v2  ;;  %v33_v5 = vld [vmem:[%s650_s2] sm:$0xff]  ;;  %v34_v8 = vld [vmem:[%s650_s2 + $0x8] sm:$0xff]  ;;  %v36_v10 = vld [vmem:[%s650_s2 + $0x18] sm:$0xff] }
   0x4   :  { %470 = vmatprep.subr.bf16.mxu0 %v469_v3  ;;  %39 = vperm.xlu0 %492, %v33_v5  }
   0x5   :  { %472 = vmatpush3.bf16.msra.mxu0 %v469_v3 }
   0x6   :  { %12 = vsyncpa [#allocation3], 0  ;;  %v30_v11 = vld [vmem:[%s649_s1 + $0x18] sm:$0xff]  ;;  %v163_v12 = vld [vmem:[%s652_s4] sm:$0xff]  ;;  %54 = vperm.xlu1 %493, %v36_v10   ;;  %vm187_vm1 = vcmask 261120   ;;  %v523_v39 = vmov 0.0|0.0  }
   0x7   :  { %v164_v13 = vld [vmem:[%s652_s4 + $0x8] sm:$0xff]  ;;  %v165_v14 = vld [vmem:[%s652_s4 + $0x10] sm:$0xff]  ;;  %v166_v15 = vld [vmem:[%s652_s4 + $0x18] sm:$0xff]  ;;  %481 = vmatprep.subr.bf16.mxu0 %v523_v39  ;;  %vm524_vm2 = vmmov 0   ;;  %v525_v40 = vmov 0.0   ;;  %vm369_vm3 = vcmask 1045504  }
   0x8   :  { %439 = vmatmul.mubr.msk.f32.vlgmr.msra.gmra.mrb[0].mxu0 %vm57_vm0, %v28_v7  ;;  %44 = vperm.xlu0 %492, %v34_v8   ;;  %v290_v16 = vld [vmem:[%s654_s6] sm:$0x3f]  ;;  %v160_v36 = vld [vmem:[%s651_s3 + $0x8] sm:$0xff]  ;;  %v161_v37 = vld [vmem:[%s651_s3 + $0x10] sm:$0xff] }
   0x9   :  { %441 = vmatprep.mubr.msk.f32.mxu0 %vm57_vm0, %v29_v9  ;;  %v159_v17 = vld [vmem:[%s651_s3] sm:$0xff]  ;;  %v162_v38 = vld [vmem:[%s651_s3 + $0x18] sm:$0xff] }
   0xa   :  { %174 = vperm.xlu1 %493, %v164_v13   ;;  %452 = vmatprep.mubr.msk.f32.mxu1 %vm187_vm1, %v159_v17  ;;  %v289_v59 = vld [vmem:[%s653_s5] sm:$0x3f]  ;;  %s526_s5 = smov [#allocation2]  }
   0xb   :  { %s398_s11 = sshll.u32 %s526_s5, 4  ;;  %s399_s11 = int_to_ptr.vmem [resolvable:$true] %s398_s11 }
   0xc   :  { %442 = vmatmul.mubr.msk.f32.gmra.mrb[2].mxu0 %vm57_vm0, %v30_v11  ;;  %169 = vperm.xlu0 %492, %v163_v12   ;;  %s498_s12 = scalar_lea.vmem %s399_s11, 128  ;;  %p503_p1 = scmp.lt.s32.totalorder %s399_s11, %s399_s11 }
   0xd   :  { %466 = vmatprep.mubr.msk.f32.mxu0 %vm524_vm2, %v525_v40  ;;  %p499_p0 = scmp.ne.s32.totalorder %s399_s11, %s498_s12  ;;  %p504_p2 = scmp.lt.s32.totalorder %s498_s12, %s498_s12 }
   0xe   :  { %184 = vperm.xlu1 %493, %v166_v15  }
   0xf   :  { %p505_p3 = por %p504_p2, %p503_p1 }
  0x10   :  { %179 = vperm.xlu0 %492, %v165_v14  }
  0x11   :  { %p506_p4 = pnand %p505_p3, %p499_p0 }
  0x14   :  { %293 = vperm.xlu0 %492, %v290_v16  }
  0x81   :  { %v50_v19 = vpop.permute.xlu1 %49 }
  0x83   :  { %v40_v18 = vpop.permute.xlu0 %39 }
  0x85   :  { %v55_v26 = vpop.permute.xlu1 %54 }
  0x87   :  { %v45_v20 = vpop.permute.xlu0 %44 }
  0x89   :  { %v175_v41 = vpop.permute.xlu1 %174 }
  0x8b   :  { %v170_v42 = vpop.permute.xlu0 %169 }
  0x8d   :  { %v185_v48 = vpop.permute.xlu1 %184 }
  0x8f   :  { %v180_v51 = vpop.permute.xlu0 %179 }
  0x93   :  { %v294_v60 = vpop.permute.xlu0 %293 }
  0xdb   :  { %v440_v21 = vpop.f32.mrb[0].mxu0 }
  0xdc   :  { %v142_v22 = vadd.f32 %v440_v21, %v45_v20  ;;  %v136_v23 = vpop.f32.mrb[1].mxu0 }
  0xdd   :  { %v137_v24 = vadd.f32 %v136_v23, %v40_v18 }
  0xde   :  { %v156_v25 = vmax.f32 %v142_v22, 0.0 }
  0xdf   :  { %v155_v27 = vmax.f32 %v137_v24, 0.0  ;;  %v443_v28 = vpop.f32.mrb[2].mxu0 }
  0xe0   :  { %v152_v29 = vadd.f32 %v443_v28, %v55_v26  ;;  %v146_v30 = vpop.f32.mrb[3].mxu0 }
  0xe1   :  { %v147_v31 = vadd.f32 %v146_v30, %v50_v19  ;;  %v473_v32 = vpack.c.bf16 %v156_v25, %v155_v27 }
  0xe2   :  { %v158_v33 = vmax.f32 %v152_v29, 0.0 }
  0xe3   :  { %v157_v34 = vmax.f32 %v147_v31, 0.0  ;;  %474 = vmatprep.subr.bf16.mxu1 %v473_v32 }
  0xe4   :  { %476 = vmatpush3.bf16.msra.mxu1 %v473_v32 }
  0xe5   :  { %v477_v35 = vpack.c.bf16 %v158_v33, %v157_v34 }
  0xe7   :  { %478 = vmatprep.subr.bf16.mxu1 %v477_v35 }
  0xe8   :  { %480 = vmatpush3.bf16.msra.mxu1 %v477_v35 }
  0xeb   :  { %453 = vmatmul.mubr.msk.f32.vlgmr.msra.gmra.mrb[0].mxu1 %vm187_vm1, %v160_v36 }
  0xec   :  { %455 = vmatprep.mubr.msk.f32.mxu1 %vm187_vm1, %v161_v37 }
  0xef   :  { %456 = vmatmul.mubr.msk.f32.gmra.mrb[2].mxu1 %vm187_vm1, %v162_v38 }
 0x1be   :  { %v454_v43 = vpop.f32.mrb[0].mxu1 }
 0x1bf   :  { %v272_v44 = vadd.f32 %v454_v43, %v175_v41  ;;  %v266_v45 = vpop.f32.mrb[1].mxu1 }
 0x1c0   :  { %v267_v46 = vadd.f32 %v266_v45, %v170_v42 }
 0x1c1   :  { %v286_v47 = vmax.f32 %v272_v44, 0.0 }
 0x1c2   :  { %v285_v49 = vmax.f32 %v267_v46, 0.0  ;;  %v457_v50 = vpop.f32.mrb[2].mxu1 }
 0x1c3   :  { %v282_v52 = vadd.f32 %v457_v50, %v185_v48  ;;  %v276_v53 = vpop.f32.mrb[3].mxu1 }
 0x1c4   :  { %v482_v54 = vpack.c.bf16 %v286_v47, %v285_v49  ;;  %v277_v55 = vadd.f32 %v276_v53, %v180_v51 }
 0x1c5   :  { %v288_v56 = vmax.f32 %v282_v52, 0.0 }
 0x1c6   :  { %v287_v57 = vmax.f32 %v277_v55, 0.0  ;;  %483 = vmatpush3.bf16.msra.mxu0 %v482_v54 }
 0x1c7   :  { %484 = vmatprep.subr.bf16.mxu0 %v523_v39 }
 0x1c8   :  { %v485_v58 = vpack.c.bf16 %v288_v56, %v287_v57 }
 0x1ca   :  { %486 = vmatpush3.bf16.msra.mxu0 %v485_v58 }
 0x1cd   :  { %467 = vmatmul.mubr.msk.f32.vlgmr.msra.gmra.mrb[4].mxu0 %vm187_vm1, %v289_v59 }
 0x2a0   :  { %v365_v61 = vpop.f32.mrb[4].mxu0 }
 0x2a1   :  { %v366_v62 = vadd.f32 %v365_v61, %v294_v60  ;;  %v468_v63 = vpop.f32.mrb[5].mxu0 }
 0x2a3   :  { %v370_v0 = vsel %vm369_vm3, %v366_v62, -inf }
 0x2a4   :  { %v371_v1 = vrot.slane %v370_v0, 4 }
 0x2a6   :  { %v372_v2 = vmax.f32 %v370_v0, %v371_v1 }
 0x2a8   :  { %v373_v3 = vrot.slane %v372_v2, 2 }
 0x2aa   :  { %v374_v4 = vmax.f32 %v372_v2, %v373_v3 }
 0x2ac   :  { %v375_v5 = vrot.slane %v374_v4, 1 }
 0x2ae   :  { %v376_v6 = vmax.f32 %v374_v4, %v375_v5 }
 0x2b0   :  { %v377_v7 = vsub.f32 %v366_v62, %v376_v6 }
 0x2b2   :  { %v378_v8 = vmul.f32 1.442695, %v377_v7 }
 0x2b4   :  { %494 = vpow2.f32 %v378_v8 }
 0x2be   :  { %v495_v9 = vpop.eup %494 }
 0x2bf   :  { %v380_v10 = vsel %vm369_vm3, %v495_v9, 0.0 }
 0x2c0   :  { %v381_v11 = vrot.slane %v380_v10, 4 }
 0x2c2   :  { %v382_v12 = vadd.f32 %v381_v11, %v380_v10 }
 0x2c4   :  { %v383_v13 = vrot.slane %v382_v12, 2 }
 0x2c6   :  { %v384_v14 = vadd.f32 %v383_v13, %v382_v12 }
 0x2c8   :  { %v385_v15 = vrot.slane %v384_v14, 1 }
 0x2ca   :  { %v386_v16 = vadd.f32 %v385_v15, %v384_v14 }
 0x2cc   :  { %496 = vlog2.f32 %v386_v16 }
 0x2d6   :  { %v497_v17 = vpop.eup %496 }
 0x2d7   :  { %v388_v18 = vmul.f32 0.6931472, %v497_v17 }
 0x2d9   :  { %v389_v19 = vadd.f32 %v388_v18, %v376_v6 }
 0x2db   :  { %v390_v20 = vsub.f32 %v366_v62, %v389_v19 }
 0x2dd   :  { %391 = vst [vmem:[#allocation2] sm:$0x3f] %v390_v20 }
 0x2de   :  { %509 = shalt.err (!%p506_p4)
}
 0x2df   :  { %s510_s15 = scalar_lea.hbm %s655_s7, 128 }
 0x2e0   :  { %p511_p5 = scmp.ne.s32.totalorder %s655_s7, %s510_s15  ;;  %p514_p6 = scmp.lt.u32.totalorder %s510_s15, %s655_s7 }
 0x2e2   :  { %p516_p7 = pnand %p514_p6, %p511_p5 }
 0x2e4   :  { %519 = shalt.err (!%p516_p7)
}
 0x2e5   :  { %401 = dma.vmem_to_hbm [thread:$0]  %s399_s11, 128, %s655_s7, [#allocation3]  }
 0x2e6   :  { %520 = dma.done.wait [#allocation3], 128  }
 0x2e7   :  { %521 = vsyncadd [#allocation3], 4294967168 }
 0x2e8   :  { %405 = vsyncpa [#allocation3], 1 }

</bundles_post_ra>
